<compile_context>
chip_gen: v6e
topology: v6e:2x2x1
jax: 0.10.0
libtpu: 0.0.40
codegen_flags: <defaults>
</compile_context>

<pallas_src>
import math

import numpy as np
import jax
import jax.numpy as jnp
from jax.experimental import pallas as pl
from jax.experimental.pallas import tpu as pltpu


# ----------------------------------------------------------------------------
# Fused kernel
# ----------------------------------------------------------------------------
def _make_spp_kernel(pyramid_bins, *, C, L, mode):
    """Build the fused kernel body; all shape/config decisions are static."""
    nb = len(pyramid_bins)

    def kernel(x_ref, w1_ref, b1_ref, w2_ref, v_ref, out_ref):
        x2d = x_ref[...]                                   # (TB, C*L), C-major lanes
        rows = x2d.shape[0]

        if mode == "avg":
            feat = x2d                                     # avg pool folded into W1
        else:
            # max pool is not linear -> do it in-kernel, then conv via matmul.
            parts = []
            for bn in pyramid_bins:
                stride = L // bn
                ksz = L - (bn - 1) * stride
                if ksz == stride:                          # L % bn == 0 fast path
                    parts.append(jnp.max(x2d.reshape(rows, C * bn, ksz), axis=-1))
                else:                                      # overlapping windows (rare)
                    cols = []
                    for c in range(C):
                        xc = x2d[:, c * L:(c + 1) * L]
                        tcols = [jnp.max(xc[:, t * stride:t * stride + ksz],
                                         axis=1, keepdims=True)
                                 for t in range(bn)]
                        cols.append(tcols[0] if bn == 1
                                    else jnp.concatenate(tcols, axis=1))
                    parts.append(cols[0] if C == 1
                                 else jnp.concatenate(cols, axis=1))
            feat = parts[0] if nb == 1 else jnp.concatenate(parts, axis=1)  # (TB, C*S)

        # (pool +) conv + bias + ReLU  for all bins / all 4 out-channels at once.
        z = jnp.dot(feat, w1_ref[...], preferred_element_type=jnp.float32)  # (TB, 4S)
        z = jnp.maximum(z + b1_ref[...], 0.0)
        # folded (1/4 channel mean + miniAE + residual) for all bins.
        out = jnp.dot(z, w2_ref[...], preferred_element_type=jnp.float32) + v_ref[...]
        out_ref[...] = out.astype(out_ref.dtype)                            # (TB, S)

    return kernel


# ----------------------------------------------------------------------------
# Wrapper
# ----------------------------------------------------------------------------
def spatial_pyramid_block(x, packed, pyramid_bins, mode="avg"):
    """x: (B, C, L) float32 -> (B, sum(pyramid_bins)) float32."""
    B, C, L = x.shape
    S = sum(pyramid_bins)
    x2d = x.reshape(B, C * L)          # contiguous view: no transpose, no HBM pass

    w1, b1, w2, v = packed["w1"], packed["b1"], packed["w2"], packed["v"]
    K, S4 = w1.shape

    tb = B if B <= 512 else 512        # batch-row tile (full batch at small B)
    grid = (pl.cdiv(B, tb),)

    kern = _make_spp_kernel(tuple(pyramid_bins), C=C, L=L, mode=mode)
    return pl.pallas_call(
        kern,
        out_shape=jax.ShapeDtypeStruct((B, S), jnp.float32),
        grid_spec=pltpu.PrefetchScalarGridSpec(
            num_scalar_prefetch=0,
            grid=grid,
            in_specs=[
                pl.BlockSpec((tb, C * L), lambda i: (i, 0)),   # x tile
                pl.BlockSpec((K, S4), lambda i: (0, 0)),       # W1 (resident)
                pl.BlockSpec((1, S4), lambda i: (0, 0)),       # b1
                pl.BlockSpec((S4, S), lambda i: (0, 0)),       # W2
                pl.BlockSpec((1, S), lambda i: (0, 0)),        # v
            ],
            out_specs=pl.BlockSpec((tb, S), lambda i: (i, 0)),
        ),
        compiler_params=pltpu.CompilerParams(dimension_semantics=("parallel",)),
    )(x2d, w1, b1, w2, v)


# ----------------------------------------------------------------------------
# Parameters: synthetic init + one-time packing / weight folding
# ----------------------------------------------------------------------------
def init_raw_params(key, pyramid_bins, entry_channels):
    """Deterministic synthetic parameters with the shapes implied by __init__."""
    raw = []
    for i, size in enumerate(pyramid_bins):
        k = jax.random.fold_in(key, i)
        kc, kcb, k1, k1b, k2, k2b = jax.random.split(k, 6)
        h = math.ceil(size / 2)
        raw.append((
            0.3 * jax.random.normal(kc, (4, entry_channels, 3), jnp.float32),   # conv W
            0.1 * jax.random.normal(kcb, (4,), jnp.float32),                    # conv b
            0.3 * jax.random.normal(k1, (h, size), jnp.float32),                # lin1 W
            0.1 * jax.random.normal(k1b, (h,), jnp.float32),                    # lin1 b
            0.3 * jax.random.normal(k2, (size, h), jnp.float32),                # lin2 W
            0.1 * jax.random.normal(k2b, (size,), jnp.float32),                 # lin2 b
        ))
    return raw


def pack_params(raw_params, pyramid_bins, entry_channels, input_length, mode):
    """One-time weight folding (host side, outside the kernel hot path).

    avg : W1 folds (adaptive avg pool + Conv1d taps) -> (C*L, 4S)
    max : W1 folds (Conv1d taps) over the pooled slab -> (C*S, 4S)
    W2  : folds (1/4 channel mean + miniAE Linear->Linear + residual) -> (4S, S)
    """
    C, L = entry_channels, input_length
    S = sum(pyramid_bins)
    S4 = 4 * S
    K = C * L if mode == "avg" else C * S

    w1 = np.zeros((K, S4), np.float32)
    b1 = np.zeros((1, S4), np.float32)
    w2 = np.zeros((S4, S), np.float32)
    v = np.zeros((1, S), np.float32)

    off = 0
    for i, bn in enumerate(pyramid_bins):
        conv_w, conv_b, lw1, lb1, lw2, lb2 = [np.asarray(a) for a in raw_params[i]]
        off4 = 4 * off
        stride = L // bn
        ksz = L - (bn - 1) * stride
        for o in range(4):
            b1[0, off4 + o * bn: off4 + (o + 1) * bn] = conv_b[o]
            for t in range(bn):
                col = off4 + o * bn + t
                for s in range(3):
                    tp = t + s - 1                         # pooled index feeding tap s
                    if tp < 0 or tp >= bn:
                        continue                           # Conv1d zero padding
                    for c in range(C):
                        if mode == "avg":                  # fold the avg pool too
                            r0 = c * L + tp * stride
                            for r in range(r0, r0 + ksz):
                                w1[r, col] += conv_w[o, c, s] / ksz
                        else:                              # conv only (max pool in-kernel)
                            w1[C * off + c * bn + tp, col] += conv_w[o, c, s]
        # 1/4 channel mean + miniAE (Linear->Linear, no nonlinearity) + residual
        m = 0.25 * (np.eye(bn, dtype=np.float32) + lw1.T @ lw2.T)
        for o in range(4):
            w2[off4 + o * bn: off4 + (o + 1) * bn, off: off + bn] = m
        v[0, off: off + bn] = lb1 @ lw2.T + lb2
        off += bn

    return dict(w1=jnp.asarray(w1), b1=jnp.asarray(b1),
                w2=jnp.asarray(w2), v=jnp.asarray(v))


# ----------------------------------------------------------------------------
# Pure-JAX mirror of the PyTorch forward pass, for verification
# ----------------------------------------------------------------------------
def reference_forward(x, raw_params, pyramid_bins, mode="avg"):
    B, C, L = x.shape
    outs = []
    for i, bin_size in enumerate(pyramid_bins):
        conv_w, conv_b, w1, b1, w2, b2 = raw_params[i]
        stride = L // bin_size
        ksz = L - (bin_size - 1) * stride
        cols = []
        for t in range(bin_size):
            win = x[:, :, t * stride: t * stride + ksz]
            cols.append(jnp.mean(win, -1) if mode == "avg" else jnp.max(win, -1))
        xp = jnp.stack(cols, axis=-1)                                  # (B, C, bin)
        xpad = jnp.pad(xp, ((0, 0), (0, 0), (1, 1)))
        conv = jnp.zeros((B, 4, bin_size), jnp.float32)
        for s in range(3):
            conv = conv + jnp.einsum("bct,oc->bot",
                                     xpad[:, :, s:s + bin_size], conv_w[:, :, s])
        conv = jax.nn.relu(conv + conv_b[None, :, None])
        gblp = jnp.mean(conv, axis=1)                                  # (B, bin)
        ae = (gblp @ w1.T + b1) @ w2.T + b2
        outs.append(gblp + ae)
    return jnp.concatenate(outs, axis=1)


if __name__ == "__main__":
    B, C, L = 2, 4, 16                 # (batch, entry_channels, input_length)
    pyramid_bins = [8, 4, 2]

    key = jax.random.PRNGKey(0)
    kx, kp = jax.random.split(key)
    x = jax.random.normal(kx, (B, C, L), jnp.float32)   # (Batch, Channels, Length)
    raw_params = init_raw_params(kp, pyramid_bins, C)

    for mode in ("avg", "max"):
        packed = pack_params(raw_params, pyramid_bins, C, L, mode)
        out = spatial_pyramid_block(x, packed, pyramid_bins, mode)
        out = jax.block_until_ready(out)
        assert out.shape == (B, sum(pyramid_bins)), out.shape
        ref = reference_forward(x, raw_params, pyramid_bins, mode)
        if not bool(jnp.allclose(out, ref, atol=1e-3, rtol=1e-3)):
            raise AssertionError(
                f"[{mode}] mismatch vs reference, "
                f"max abs err = {float(jnp.max(jnp.abs(out - ref)))}")

    print("KERNEL_OK")
</pallas_src>

<mosaic_0001>
module attributes {stable_mosaic.version = 11 : i64} {
  func.func @kernel(%arg0: i32, %arg1: memref<2x64xf32, #tpu.memory_space<vmem>>, %arg2: memref<64x56xf32, #tpu.memory_space<vmem>>, %arg3: memref<1x56xf32, #tpu.memory_space<vmem>>, %arg4: memref<56x14xf32, #tpu.memory_space<vmem>>, %arg5: memref<1x14xf32, #tpu.memory_space<vmem>>, %arg6: memref<2x14xf32, #tpu.memory_space<vmem>>) attributes {dimension_semantics = [#tpu.dimension_semantics<parallel>], iteration_bounds = array<i64: 1>, scalar_prefetch = 0 : i64, scratch_operands = 0 : i64, tpu.core_type = #tpu.core_type<tc>, window_params = [{transform_indices = @transform_0, window_bounds = array<i64: 2, 64>}, {pipeline_mode = #tpu.pipeline_mode<synchronous>, transform_indices = @transform_1, window_bounds = array<i64: 64, 56>}, {pipeline_mode = #tpu.pipeline_mode<synchronous>, transform_indices = @transform_2, window_bounds = array<i64: 1, 56>}, {pipeline_mode = #tpu.pipeline_mode<synchronous>, transform_indices = @transform_3, window_bounds = array<i64: 56, 14>}, {pipeline_mode = #tpu.pipeline_mode<synchronous>, transform_indices = @transform_4, window_bounds = array<i64: 1, 14>}, {transform_indices = @transform_5, window_bounds = array<i64: 2, 14>}]} {
    %c0 = arith.constant 0 : index
    %c0_0 = arith.constant 0 : index
    %0 = vector.load %arg1[%c0, %c0_0] : memref<2x64xf32, #tpu.memory_space<vmem>>, vector<2x64xf32>
    %c0_1 = arith.constant 0 : index
    %c0_2 = arith.constant 0 : index
    %1 = vector.load %arg2[%c0_1, %c0_2] : memref<64x56xf32, #tpu.memory_space<vmem>>, vector<64x56xf32>
    %cst = arith.constant dense<0.000000e+00> : vector<2x56xf32>
    %2 = tpu.matmul %0, %1, %cst {dimension_numbers = #tpu.dot_dimension_numbers<[1], [0], [0], [1], [0, 0, 1, 1], [], []>} : vector<2x64xf32>, vector<64x56xf32>, vector<2x56xf32> -> vector<2x56xf32>
    %c0_3 = arith.constant 0 : index
    %c0_4 = arith.constant 0 : index
    %3 = vector.load %arg3[%c0_3, %c0_4] : memref<1x56xf32, #tpu.memory_space<vmem>>, vector<1x56xf32>
    %4 = vector.broadcast %3 : vector<1x56xf32> to vector<2x56xf32>
    %5 = arith.addf %2, %4 : vector<2x56xf32>
    %cst_5 = arith.constant 0.000000e+00 : f32
    %6 = vector.broadcast %cst_5 : f32 to vector<2x56xf32>
    %7 = arith.maximumf %5, %6 : vector<2x56xf32>
    %c0_6 = arith.constant 0 : index
    %c0_7 = arith.constant 0 : index
    %8 = vector.load %arg4[%c0_6, %c0_7] : memref<56x14xf32, #tpu.memory_space<vmem>>, vector<56x14xf32>
    %cst_8 = arith.constant dense<0.000000e+00> : vector<2x14xf32>
    %9 = tpu.matmul %7, %8, %cst_8 {dimension_numbers = #tpu.dot_dimension_numbers<[1], [0], [0], [1], [0, 0, 1, 1], [], []>} : vector<2x56xf32>, vector<56x14xf32>, vector<2x14xf32> -> vector<2x14xf32>
    %c0_9 = arith.constant 0 : index
    %c0_10 = arith.constant 0 : index
    %10 = vector.load %arg5[%c0_9, %c0_10] : memref<1x14xf32, #tpu.memory_space<vmem>>, vector<1x14xf32>
    %11 = vector.broadcast %10 : vector<1x14xf32> to vector<2x14xf32>
    %12 = arith.addf %9, %11 : vector<2x14xf32>
    %c0_11 = arith.constant 0 : index
    %c0_12 = arith.constant 0 : index
    %13 = vector.load %arg6[%c0_11, %c0_12] : memref<2x14xf32, #tpu.memory_space<vmem>>, vector<2x14xf32>
    tpu.vector_store %arg6[%c0_11, %c0_12], %12 {strides = array<i32>} : memref<2x14xf32, #tpu.memory_space<vmem>>, vector<2x14xf32>,
    return
  }
  func.func @transform_0(%arg0: i32) -> (i32, i32) {
    %c0_i32 = arith.constant 0 : i32
    %c0_i32_0 = arith.constant 0 : i32
    return %arg0, %c0_i32 : i32, i32
  }
  func.func @transform_1(%arg0: i32) -> (i32, i32) {
    %c0_i32 = arith.constant 0 : i32
    %c0_i32_0 = arith.constant 0 : i32
    %c0_i32_1 = arith.constant 0 : i32
    return %c0_i32, %c0_i32_0 : i32, i32
  }
  func.func @transform_2(%arg0: i32) -> (i32, i32) {
    %c0_i32 = arith.constant 0 : i32
    %c0_i32_0 = arith.constant 0 : i32
    %c0_i32_1 = arith.constant 0 : i32
    return %c0_i32, %c0_i32_0 : i32, i32
  }
  func.func @transform_3(%arg0: i32) -> (i32, i32) {
    %c0_i32 = arith.constant 0 : i32
    %c0_i32_0 = arith.constant 0 : i32
    %c0_i32_1 = arith.constant 0 : i32
    return %c0_i32, %c0_i32_0 : i32, i32
  }
  func.func @transform_4(%arg0: i32) -> (i32, i32) {
    %c0_i32 = arith.constant 0 : i32
    %c0_i32_0 = arith.constant 0 : i32
    %c0_i32_1 = arith.constant 0 : i32
    return %c0_i32, %c0_i32_0 : i32, i32
  }
  func.func @transform_5(%arg0: i32) -> (i32, i32) {
    %c0_i32 = arith.constant 0 : i32
    %c0_i32_0 = arith.constant 0 : i32
    return %arg0, %c0_i32 : i32, i32
  }
}

</mosaic_0001>

<bundles_post_ra>
// kernel: tpu_custom_call.1
= control target key start
LH: loop header
LB: loop body
LE: loop exit
PB: predicated region body
PF: predicated region fallthrough
CT: control target
= control target key end

     0   :  { %v298_v1 = vmov 0.0   ;;  %vm299_vm0 = vmmov 0   ;;  %s388_s0 = inlined_call_operand.vmem [shape: f32[2,64], index: 0, kind: input, shape index: {}]   ;;  %s389_s1 = inlined_call_operand.vmem [shape: f32[64,56], index: 1, kind: input, shape index: {}]   ;;  %s390_s2 = inlined_call_operand.vmem [shape: f32[1,56], index: 2, kind: input, shape index: {}]   ;;  %s391_s3 = inlined_call_operand.vmem [shape: f32[56,14], index: 3, kind: input, shape index: {}]   ;;  %s392_s4 = inlined_call_operand.vmem [shape: f32[1,14], index: 4, kind: input, shape index: {}]   ;;  %s393_s5 = inlined_call_operand.hbm [shape: f32[2,14], index: 5, kind: output, shape index: {}]  }
   0x1   :  { %v29_v0 = vld [vmem:[%s389_s1 + $0x38] sm:$0xff]  ;;  %237 = vmatprep.subr.mxu0 %v298_v1  ;;  %v28_v2 = vld [vmem:[%s389_s1 + $0x30] sm:$0xff]  ;;  %253 = vmatprep.mubr.msk.f32.mxu0 %vm299_vm0, %v298_v1  ;;  %v27_v3 = vld [vmem:[%s389_s1 + $0x28] sm:$0xff] }
   0x2   :  { %238 = vmatpush3.msra.mxu0 %v29_v0  ;;  %256 = vmatprep.subr.mxu1 %v298_v1  ;;  %v118_v4 = vld [vmem:[%s391_s3 + $0x30] sm:$0xff]  ;;  %v117_v5 = vld [vmem:[%s391_s3 + $0x28] sm:$0xff] }
   0x3   :  { %239 = vmatprep.subr.mxu0 %v298_v1  ;;  %270 = vmatprep.mubr.msk.f32.mxu1 %vm299_vm0, %v298_v1 }
   0x4   :  { %240 = vmatpush3.msra.mxu0 %v28_v2  ;;  %257 = vmatpush3.msra.mxu1 %v118_v4 }
   0x5   :  { %10 = vsyncpa [#allocation3], 0  ;;  %241 = vmatprep.subr.mxu0 %v298_v1  ;;  %v26_v6 = vld [vmem:[%s389_s1 + $0x20] sm:$0xff]  ;;  %258 = vmatprep.subr.mxu1 %v298_v1  ;;  %v25_v8 = vld [vmem:[%s389_s1 + $0x18] sm:$0xff]  ;;  %vm37_vm1 = vcmask 523264   ;;  %vm126_vm2 = vcmask 457728  }
   0x6   :  { %v116_v7 = vld [vmem:[%s391_s3 + $0x20] sm:$0xff]  ;;  %242 = vmatpush3.msra.mxu0 %v27_v3  ;;  %259 = vmatpush3.msra.mxu1 %v117_v5  ;;  %v115_v9 = vld [vmem:[%s391_s3 + $0x18] sm:$0xff]  ;;  %v24_v10 = vld [vmem:[%s389_s1 + $0x10] sm:$0xff]  ;;  %s300_s27 = smov [#allocation2]   ;;  %vm200_vm3 = vcmask 107520  }
   0x7   :  { %243 = vmatprep.subr.mxu0 %v298_v1  ;;  %260 = vmatprep.subr.mxu1 %v298_v1  ;;  %v23_v11 = vld [vmem:[%s389_s1 + $0x8] sm:$0xff]  ;;  %v22_v12 = vld [vmem:[%s389_s1] sm:$0xff]  ;;  %v114_v14 = vld [vmem:[%s391_s3 + $0x10] sm:$0xff]  ;;  %s208_s28 = sshll.u32 %s300_s27, 4  ;;  %s209_s28 = int_to_ptr.vmem [resolvable:$true] %s208_s28 }
   0x8   :  { %244 = vmatpush3.msra.mxu0 %v26_v6  ;;  %261 = vmatpush3.msra.mxu1 %v116_v7  ;;  %v21_v13 = vld [vmem:[%s388_s0] sm:$0x3]  ;;  %v113_v15 = vld [vmem:[%s391_s3 + $0x8] sm:$0xff]  ;;  %p281_p1 = scmp.lt.s32.totalorder %s209_s28, %s209_s28 }
   0x9   :  { %245 = vmatprep.subr.mxu0 %v298_v1  ;;  %262 = vmatprep.subr.mxu1 %v298_v1  ;;  %v112_v16 = vld [vmem:[%s391_s3] sm:$0xff]  ;;  %s276_s3 = scalar_lea.vmem %s209_s28, 32 }
   0xa   :  { %246 = vmatpush3.msra.mxu0 %v25_v8  ;;  %263 = vmatpush3.msra.mxu1 %v115_v9  ;;  %v216_v17 = vld [vmem:[%s390_s2] ss:$0 sm:$0xff]  ;;  %p277_p0 = scmp.ne.s32.totalorder %s209_s28, %s276_s3  ;;  %p282_p2 = scmp.lt.s32.totalorder %s276_s3, %s276_s3 }
   0xb   :  { %247 = vmatprep.subr.mxu0 %v298_v1  ;;  %264 = vmatprep.subr.mxu1 %v298_v1  ;;  %v218_v22 = vld [vmem:[%s392_s4] ss:$0 sm:$0xff] }
   0xc   :  { %248 = vmatpush3.msra.mxu0 %v24_v10  ;;  %265 = vmatpush3.msra.mxu1 %v114_v14  ;;  %p283_p3 = por %p282_p2, %p281_p1 }
   0xd   :  { %249 = vmatprep.subr.mxu0 %v298_v1  ;;  %266 = vmatprep.subr.mxu1 %v298_v1 }
   0xe   :  { %250 = vmatpush3.msra.mxu0 %v23_v11  ;;  %267 = vmatpush3.msra.mxu1 %v113_v15  ;;  %p284_p4 = pnand %p283_p3, %p277_p0 }
   0xf   :  { %251 = vmatprep.subr.mxu0 %v298_v1  ;;  %268 = vmatprep.subr.mxu1 %v298_v1 }
  0x10   :  { %252 = vmatpush3.msra.mxu0 %v22_v12  ;;  %269 = vmatpush3.msra.mxu1 %v112_v16 }
  0x11   :  { %254 = vmatmul.mubr.msk.f32.vlgmr.msra.gmra.mxu0 %vm37_vm1, %v21_v13 }
  0xd1   :  { %v107_v18 = vpop.f32.mrf.mxu0 }
  0xd2   :  { %v108_v19 = vadd.f32 %v216_v17, %v107_v18 }
  0xd3   :  { %v255_v20 = vpop.f32.mrf.mxu0 }
  0xd4   :  { %v111_v21 = vmax.f32 %v108_v19, 0.0 }
  0xd6   :  { %271 = vmatmul.mubr.msk.f32.vlgmr.msra.gmra.mxu1 %vm126_vm2, %v111_v21 }
 0x196   :  { %v196_v23 = vpop.f32.mrf.mxu1 }
 0x197   :  { %v197_v24 = vadd.f32 %v218_v22, %v196_v23 }
 0x198   :  { %v272_v25 = vpop.f32.mrf.mxu1 }
 0x199   :  { %201 = vst.msk [vmem:[#allocation2] sm:$0x3] %vm200_vm3, %v197_v24 }
 0x19a   :  { %287 = shalt.err (!%p284_p4)
}
 0x19b   :  { %211 = dma.vmem_to_hbm [thread:$0]  %s209_s28, 32, %s393_s5, [#allocation3]  }
 0x19c   :  { %296 = dma.done.wait [#allocation3], 32  }
 0x19d   :  { %297 = vsyncadd [#allocation3], 4294967264 }
 0x19e   :  { %215 = vsyncpa [#allocation3], 1 }

</bundles_post_ra>
